<compile_context>
chip_gen: v6e
topology: v6e:2x2x1
jax: 0.10.0
libtpu: 0.0.40
codegen_flags: <defaults>
</compile_context>

<pallas_src>
import jax
import jax.numpy as jnp
from jax.experimental import pallas as pl
from jax.experimental.pallas import tpu as pltpu

_SQRT_HALF = 0.7071067811865476       # 1 / sqrt(2)
_TILE_BYTES = 4 * 1024 * 1024         # ~4 MiB per block buffer (per review)


def _gelu_kernel(x_ref, o_ref):
    # Compute in f32 (accurate for bf16 inputs); single cast-on-store.
    x = x_ref[...].astype(jnp.float32)
    ax = jnp.abs(x)
    az = ax * _SQRT_HALF              # |x| / sqrt(2)  >= 0

    # erf(|z|) via Abramowitz & Stegun 7.1.26 (|err| < 1.5e-7).
    # Reciprocal goes to the EUP slot; no compare/select needed since az >= 0.
    t = pl.reciprocal(1.0 + 0.3275911 * az, approx=False)
    poly = ((((1.061405429 * t - 1.453152027) * t + 1.421413741) * t
             - 0.284496736) * t + 0.254829592) * t
    erf_abs = 1.0 - poly * jnp.exp(-(az * az))

    # Exact GELU: 0.5*x*(1 + erf(z)) with x*erf(z) == |x|*erf(|z|)  (odd erf).
    o_ref[...] = (0.5 * (x + ax * erf_abs)).astype(o_ref.dtype)


def gelu_pallas(x: jax.Array) -> jax.Array:
    """Pallas TPU GELU (exact / erf formulation), any input shape."""
    orig_shape = x.shape
    orig_dtype = x.dtype
    total = x.size
    if total == 0:
        return x

    flat = x.reshape(-1)

    # Widest lane-dense column count that divides total -> pad-free reshape.
    cols = None
    for c in (2048, 1024, 512, 256, 128):
        if total % c == 0:
            cols = c
            break
    if cols is None:
        # Rare fallback: total not a multiple of 128 -> pad to 128 lanes.
        cols = 128
        padded = -(-total // cols) * cols
        flat = jnp.pad(flat, (0, padded - total))
    else:
        padded = total
    rows = padded // cols

    itemsize = jnp.dtype(orig_dtype).itemsize
    tm_target = max(8, (_TILE_BYTES // (cols * itemsize)) // 8 * 8)
    if rows <= tm_target:
        tm = rows                      # full-dim block (no (8,128) constraint)
        grid = (1,)
    else:
        tm = tm_target                 # multiple of 8
        grid = (pl.cdiv(rows, tm),)    # boundary block masked by Pallas

    x2d = flat.reshape(rows, cols)

    out2d = pl.pallas_call(
        _gelu_kernel,
        out_shape=jax.ShapeDtypeStruct((rows, cols), orig_dtype),
        grid_spec=pltpu.PrefetchScalarGridSpec(
            num_scalar_prefetch=0,
            grid=grid,
            in_specs=[pl.BlockSpec((tm, cols), lambda i: (i, 0))],
            out_specs=pl.BlockSpec((tm, cols), lambda i: (i, 0)),
        ),
        compiler_params=pltpu.CompilerParams(
            dimension_semantics=("parallel",),
            vmem_limit_bytes=32 << 20,
        ),
    )(x2d)

    out = out2d.reshape(-1)
    if padded != total:
        out = out[:total]
    return out.reshape(orig_shape)


if __name__ == "__main__":
    key = jax.random.PRNGKey(0)

    # Small NCHW input consistent with a conv-activation module.
    x = jax.random.normal(key, (2, 4, 16, 16), dtype=jnp.float32) * 2.0
    out = jax.block_until_ready(gelu_pallas(x))
    ref = jax.nn.gelu(x, approximate=False)
    assert out.shape == x.shape and out.dtype == x.dtype
    assert jnp.allclose(out, ref, atol=1e-5, rtol=1e-5), "mismatch vs reference"

    # Odd-sized input exercising the (rare) padded fallback path.
    key2 = jax.random.PRNGKey(1)
    y = jax.random.normal(key2, (1, 3, 7, 13), dtype=jnp.float32) * 2.0
    out_y = jax.block_until_ready(gelu_pallas(y))
    ref_y = jax.nn.gelu(y, approximate=False)
    assert out_y.shape == y.shape
    assert jnp.allclose(out_y, ref_y, atol=1e-5, rtol=1e-5), "mismatch (odd shape)"

    print("KERNEL_OK")
</pallas_src>

<mosaic_0001>
module attributes {stable_mosaic.version = 11 : i64} {
  func.func @_gelu_kernel(%arg0: i32, %arg1: memref<1x2048xf32, #tpu.memory_space<vmem>>, %arg2: memref<1x2048xf32, #tpu.memory_space<vmem>>) attributes {dimension_semantics = [#tpu.dimension_semantics<parallel>], iteration_bounds = array<i64: 1>, scalar_prefetch = 0 : i64, scratch_operands = 0 : i64, tpu.core_type = #tpu.core_type<tc>, window_params = [{transform_indices = @transform_0, window_bounds = array<i64: 1, 2048>}, {transform_indices = @transform_1, window_bounds = array<i64: 1, 2048>}]} {
    %c0 = arith.constant 0 : index
    %c0_0 = arith.constant 0 : index
    %0 = vector.load %arg1[%c0, %c0_0] : memref<1x2048xf32, #tpu.memory_space<vmem>>, vector<1x2048xf32>
    %1 = math.absf %0 : vector<1x2048xf32>
    %cst = arith.constant 0.707106769 : f32
    %2 = vector.broadcast %cst : f32 to vector<1x2048xf32>
    %3 = arith.mulf %1, %2 : vector<1x2048xf32>
    %cst_1 = arith.constant 0.327591091 : f32
    %4 = vector.broadcast %cst_1 : f32 to vector<1x2048xf32>
    %5 = arith.mulf %4, %3 : vector<1x2048xf32>
    %cst_2 = arith.constant 1.000000e+00 : f32
    %6 = vector.broadcast %cst_2 : f32 to vector<1x2048xf32>
    %7 = arith.addf %6, %5 : vector<1x2048xf32>
    %8 = tpu.reciprocal %7 : vector<1x2048xf32> -> vector<1x2048xf32>
    %cst_3 = arith.constant 1.06140542 : f32
    %9 = vector.broadcast %cst_3 : f32 to vector<1x2048xf32>
    %10 = arith.mulf %9, %8 : vector<1x2048xf32>
    %cst_4 = arith.constant 1.45315206 : f32
    %11 = vector.broadcast %cst_4 : f32 to vector<1x2048xf32>
    %12 = arith.subf %10, %11 : vector<1x2048xf32>
    %13 = arith.mulf %12, %8 : vector<1x2048xf32>
    %cst_5 = arith.constant 1.42141378 : f32
    %14 = vector.broadcast %cst_5 : f32 to vector<1x2048xf32>
    %15 = arith.addf %13, %14 : vector<1x2048xf32>
    %16 = arith.mulf %15, %8 : vector<1x2048xf32>
    %cst_6 = arith.constant 0.284496725 : f32
    %17 = vector.broadcast %cst_6 : f32 to vector<1x2048xf32>
    %18 = arith.subf %16, %17 : vector<1x2048xf32>
    %19 = arith.mulf %18, %8 : vector<1x2048xf32>
    %cst_7 = arith.constant 0.254829586 : f32
    %20 = vector.broadcast %cst_7 : f32 to vector<1x2048xf32>
    %21 = arith.addf %19, %20 : vector<1x2048xf32>
    %22 = arith.mulf %21, %8 : vector<1x2048xf32>
    %23 = arith.mulf %3, %3 : vector<1x2048xf32>
    %cst_8 = arith.constant 0.000000e+00 : f32
    %24 = vector.broadcast %cst_8 : f32 to vector<1x2048xf32>
    %25 = arith.subf %24, %23 : vector<1x2048xf32>
    %26 = math.exp %25 : vector<1x2048xf32>
    %27 = arith.mulf %22, %26 : vector<1x2048xf32>
    %cst_9 = arith.constant 1.000000e+00 : f32
    %28 = vector.broadcast %cst_9 : f32 to vector<1x2048xf32>
    %29 = arith.subf %28, %27 : vector<1x2048xf32>
    %30 = arith.mulf %1, %29 : vector<1x2048xf32>
    %31 = arith.addf %0, %30 : vector<1x2048xf32>
    %cst_10 = arith.constant 5.000000e-01 : f32
    %32 = vector.broadcast %cst_10 : f32 to vector<1x2048xf32>
    %33 = arith.mulf %32, %31 : vector<1x2048xf32>
    %c0_11 = arith.constant 0 : index
    %c0_12 = arith.constant 0 : index
    %34 = vector.load %arg2[%c0_11, %c0_12] : memref<1x2048xf32, #tpu.memory_space<vmem>>, vector<1x2048xf32>
    tpu.vector_store %arg2[%c0_11, %c0_12], %33 {strides = array<i32>} : memref<1x2048xf32, #tpu.memory_space<vmem>>, vector<1x2048xf32>,
    return
  }
  func.func @transform_0(%arg0: i32) -> (i32, i32) {
    %c0_i32 = arith.constant 0 : i32
    %c0_i32_0 = arith.constant 0 : i32
    return %arg0, %c0_i32 : i32, i32
  }
  func.func @transform_1(%arg0: i32) -> (i32, i32) {
    %c0_i32 = arith.constant 0 : i32
    %c0_i32_0 = arith.constant 0 : i32
    return %arg0, %c0_i32 : i32, i32
  }
}

</mosaic_0001>

<bundles_post_ra>
// kernel: tpu_custom_call.1
= control target key start
LH: loop header
LB: loop body
LE: loop exit
PB: predicated region body
PF: predicated region fallthrough
CT: control target
= control target key end

     0   :  { %6 = vsyncpa [#allocation3], 0  ;;  %s162_s0 = inlined_call_operand.hbm [shape: f32[1,2048], index: 0, kind: input, shape index: {}]   ;;  %s163_s1 = inlined_call_operand.hbm [shape: f32[1,2048], index: 1, kind: output, shape index: {}]  }
   0x1   :  { %7 = vsyncpa [#allocation4], 0  ;;  %s144_s6 = smov [#allocation2]  }
   0x2   :  { %s14_s7 = sshll.u32 %s144_s6, 4  ;;  %s15_s7 = int_to_ptr.vmem [resolvable:$true] %s14_s7 }
   0x3   :  { %s108_s8 = scalar_lea.vmem %s15_s7, 256  ;;  %p113_p1 = scmp.lt.s32.totalorder %s15_s7, %s15_s7 }
   0x4   :  { %p109_p0 = scmp.ne.s32.totalorder %s15_s7, %s108_s8  ;;  %p114_p2 = scmp.lt.s32.totalorder %s108_s8, %s108_s8 }
   0x6   :  { %p115_p3 = por %p114_p2, %p113_p1 }
   0x8   :  { %p116_p4 = pnand %p115_p3, %p109_p0 }
   0xa   :  { %119 = shalt.err (!%p116_p4)
}
   0xb   :  { %17 = dma.hbm_to_vmem [thread:$0]  %s162_s0, 256, %s15_s7, [#allocation3]  }
   0xc   :  { %140 = dma.done.wait [#allocation3], 256  }
   0xd   :  { %141 = vsyncadd [#allocation3], 4294967040  ;;  %v21_v0 = vld [vmem:[#allocation2] sm:$0xff]  ;;  %v22_v1 = vld [vmem:[#allocation2 + $0x8] sm:$0xff]  ;;  %s145_s0 = smov [#allocation5]  }
   0xe   :  { %v23_v2 = vand.u32 2147483647, %v21_v0  ;;  %v24_v3 = vand.u32 2147483647, %v22_v1  ;;  %s77_s11 = sshll.u32 %s145_s0, 4  ;;  %s78_s11 = int_to_ptr.vmem [resolvable:$true] %s77_s11 }
   0xf   :  { %s120_s12 = scalar_lea.vmem %s78_s11, 256  ;;  %p125_p6 = scmp.lt.s32.totalorder %s78_s11, %s78_s11 }
  0x10   :  { %v25_v4 = vmul.f32 0.70710677, %v23_v2  ;;  %v26_v5 = vmul.f32 0.70710677, %v24_v3  ;;  %p121_p5 = scmp.ne.s32.totalorder %s78_s11, %s120_s12  ;;  %p126_p7 = scmp.lt.s32.totalorder %s120_s12, %s120_s12 }
  0x12   :  { %v27_v6 = vmul.f32 0.3275911, %v25_v4  ;;  %v28_v7 = vmul.f32 0.3275911, %v26_v5  ;;  %v51_v10 = vmul.f32 %v25_v4, %v25_v4  ;;  %v52_v11 = vmul.f32 %v26_v5, %v26_v5  ;;  %p127_p8 = por %p126_p7, %p125_p6 }
  0x14   :  { %v29_v8 = vadd.f32 1.0, %v27_v6  ;;  %v30_v9 = vadd.f32 1.0, %v28_v7  ;;  %v53_v12 = vsub.f32 0.0, %v51_v10  ;;  %v54_v13 = vsub.f32 0.0, %v52_v11  ;;  %p128_p9 = pnand %p127_p8, %p121_p5 }
  0x16   :  { %92 = vrcp.f32 %v29_v8  ;;  %v55_v14 = vmul.f32 1.442695, %v53_v12  ;;  %v57_v16 = vmul.f32 1.442695, %v54_v13 }
  0x17   :  { %94 = vrcp.f32 %v30_v9 }
  0x18   :  { %96 = vpow2.f32 %v55_v14 }
  0x19   :  { %98 = vpow2.f32 %v57_v16 }
  0x23   :  { %v93_v15 = vpop.eup %92 }
  0x24   :  { %v95_v17 = vpop.eup %94  ;;  %v33_v18 = vmul.f32 1.0614054, %v93_v15 }
  0x25   :  { %v34_v19 = vmul.f32 1.0614054, %v95_v17  ;;  %v97_v33 = vpop.eup %96 }
  0x26   :  { %v86_v20 = vadd.f32 -1.4531521, %v33_v18  ;;  %v99_v35 = vpop.eup %98 }
  0x27   :  { %v87_v21 = vadd.f32 -1.4531521, %v34_v19 }
  0x28   :  { %v37_v22 = vmul.f32 %v93_v15, %v86_v20 }
  0x29   :  { %v38_v23 = vmul.f32 %v95_v17, %v87_v21 }
  0x2a   :  { %v39_v24 = vadd.f32 1.4214138, %v37_v22 }
  0x2b   :  { %v40_v25 = vadd.f32 1.4214138, %v38_v23 }
  0x2c   :  { %v41_v26 = vmul.f32 %v93_v15, %v39_v24 }
  0x2d   :  { %v42_v27 = vmul.f32 %v95_v17, %v40_v25 }
  0x2e   :  { %v88_v28 = vadd.f32 -0.28449672, %v41_v26 }
  0x2f   :  { %v89_v29 = vadd.f32 -0.28449672, %v42_v27 }
  0x30   :  { %v45_v30 = vmul.f32 %v93_v15, %v88_v28 }
  0x31   :  { %v46_v31 = vmul.f32 %v95_v17, %v89_v29 }
  0x32   :  { %v47_v32 = vadd.f32 0.2548296, %v45_v30 }
  0x33   :  { %v48_v34 = vadd.f32 0.2548296, %v46_v31 }
  0x34   :  { %v49_v36 = vmul.f32 %v93_v15, %v47_v32 }
  0x35   :  { %v50_v37 = vmul.f32 %v95_v17, %v48_v34 }
  0x36   :  { %v59_v38 = vmul.f32 %v97_v33, %v49_v36 }
  0x37   :  { %v60_v39 = vmul.f32 %v99_v35, %v50_v37 }
  0x38   :  { %v61_v40 = vsub.f32 1.0, %v59_v38 }
  0x39   :  { %v62_v41 = vsub.f32 1.0, %v60_v39 }
  0x3a   :  { %v63_v42 = vmul.f32 %v61_v40, %v23_v2 }
  0x3b   :  { %v64_v43 = vmul.f32 %v62_v41, %v24_v3 }
  0x3c   :  { %v65_v44 = vadd.f32 %v63_v42, %v21_v0 }
  0x3d   :  { %v66_v45 = vadd.f32 %v64_v43, %v22_v1 }
  0x3e   :  { %v67_v46 = vmul.f32 0.5, %v65_v44 }
  0x3f   :  { %v68_v47 = vmul.f32 0.5, %v66_v45 }
  0x40   :  { %69 = vst [vmem:[#allocation5] sm:$0xff] %v67_v46 }
  0x41   :  { %70 = vst [vmem:[#allocation5 + $0x8] sm:$0xff] %v68_v47 }
  0x42   :  { %131 = shalt.err (!%p128_p9)
}
  0x43   :  { %80 = dma.vmem_to_hbm [thread:$0]  %s78_s11, 256, %s163_s1, [#allocation4]  }
  0x44   :  { %142 = dma.done.wait [#allocation4], 256  }
  0x45   :  { %143 = vsyncadd [#allocation4], 4294967040 }
  0x46   :  { %84 = vsyncpa [#allocation3], 1 }
  0x47   :  { %85 = vsyncpa [#allocation4], 1 }

</bundles_post_ra>
